<compile_context>
chip_gen: v7x
topology: tpu7x:2x2x1
jax: 0.10.0
libtpu: 0.0.40
codegen_flags: <defaults>
</compile_context>

<pallas_src>
import functools

import jax
import jax.numpy as jnp
from jax.experimental import pallas as pl
from jax.experimental.pallas import tpu as pltpu


def baseline_kernel(x_ref, w_ref, b_ref, o_ref, acc_ref):
    # x_ref: (TB, TH) VMEM (streamed)    w_ref: (1, TH) VMEM
    # b_ref: (1, 1) SMEM scalar          o_ref: (1, TB) VMEM (lane-dense)
    # acc_ref: (TB, L) f32 VMEM scratch, L = 128 (or TH when TH % 128 != 0)
    h = pl.program_id(1)

    @pl.when(h == 0)
    def _init():
        acc_ref[...] = jnp.zeros_like(acc_ref)

    # f32 product (bf16/fp8 inputs are widened before the multiply; the whole
    # accumulation chain is f32, matching nn.Linear numerics).
    prod = x_ref[...].astype(jnp.float32) * w_ref[...].astype(jnp.float32)

    tb, th = x_ref.shape
    lanes = acc_ref.shape[1]
    if th == lanes:
        partial = prod
    else:
        # th is a multiple of `lanes` (=128): fold lane-chunks with VPU adds.
        # Slices are on (8,128) tile boundaries -> no relayout, no XLU work.
        partial = prod[:, :lanes]
        for c in range(1, th // lanes):
            partial = partial + prod[:, c * lanes:(c + 1) * lanes]
    acc_ref[...] += partial

    @pl.when(h == pl.num_programs(1) - 1)
    def _finalize():
        # Single per-row lane reduce + relayout per batch tile (not per H step).
        row_sum = jnp.sum(acc_ref[...], axis=-1)          # (TB,) f32
        out = jnp.maximum(row_sum + b_ref[0, 0], 0.0)     # bias + ReLU
        o_ref[...] = out.reshape(1, -1).astype(o_ref.dtype)


def _round_up(x, m):
    return ((x + m - 1) // m) * m


def _choose_h_tile(H, max_h_tile):
    """Tile the reduction axis only when H is large AND cleanly divisible,
    so junk lanes never feed the row sums."""
    if H <= max_h_tile:
        return H
    cand = (max_h_tile // 128) * 128
    while cand >= 128:
        if H % cand == 0:
            return cand
        cand -= 128
    # TODO(synk): huge H with no multiple-of-128 divisor falls back to one
    # (TB, H) block; TB shrinks accordingly but stays >= 128.
    return H


@functools.partial(jax.jit, static_argnames=("x_tile_bytes", "max_h_tile"))
def baseline_network(recurrent_hidden, weight, bias, *,
                     x_tile_bytes=16 * 1024 * 1024,
                     max_h_tile=4096):
    """recurrent_hidden: (B, H); weight: (1, H); bias: (1,) -> (B, 1)."""
    x = recurrent_hidden
    B, H = x.shape
    itemsize = jnp.dtype(x.dtype).itemsize

    TH = _choose_h_tile(H, max_h_tile)
    num_h = H // TH
    acc_lanes = 128 if TH % 128 == 0 else TH

    if B <= 128:
        TB = B                                  # single full-extent batch block
    else:
        # Per-row VMEM footprint: x double-buffer + f32 accumulator + out
        # double-buffer. Budget 2 * x_tile_bytes total for the row-scaled part,
        # keeping the whole kernel comfortably under v7x's 64 MiB VMEM.
        per_row = 2 * TH * itemsize + acc_lanes * 4 + 2 * itemsize
        rows = (2 * x_tile_bytes) // per_row
        TB = max(128, (rows // 128) * 128)
        TB = min(TB, 16384, max(128, (B // 128) * 128))

    num_b = pl.cdiv(B, TB)                      # ragged last block: no jnp.pad
    B_out = num_b * TB

    bias_smem = jnp.asarray(bias, jnp.float32).reshape(1, 1)

    out_flat = pl.pallas_call(
        baseline_kernel,
        out_shape=jax.ShapeDtypeStruct((1, B_out), x.dtype),
        grid=(num_b, num_h),                    # reduction axis last
        in_specs=[
            pl.BlockSpec((TB, TH), lambda i, h: (i, h)),           # streamed x tiles
            pl.BlockSpec((1, TH), lambda i, h: (0, h)),            # resident weight row
            pl.BlockSpec(memory_space=pltpu.MemorySpace.SMEM),     # bias scalar
        ],
        out_specs=pl.BlockSpec((1, TB), lambda i, h: (0, i)),      # lane-dense slab
        scratch_shapes=[pltpu.VMEM((TB, acc_lanes), jnp.float32)], # f32 accumulator
        compiler_params=pltpu.CompilerParams(
            dimension_semantics=("parallel", "arbitrary"),         # megacore on v7x
            vmem_limit_bytes=48 * 1024 * 1024,                     # safe on v5e/v6e/v7x
        ),
        cost_estimate=pl.CostEstimate(
            flops=2 * B * H,
            transcendentals=0,
            bytes_accessed=B * H * itemsize + H * itemsize + B * itemsize,
        ),
    )(x, weight, bias_smem)

    # Junk lanes from the ragged last batch tile are dropped here; they never
    # feed any reduction across rows.
    return out_flat.reshape(B_out)[:B].reshape(B, 1)


if __name__ == "__main__":
    key = jax.random.PRNGKey(0)
    k_x, k_w, k_b = jax.random.split(key, 3)

    # Small shapes consistent with the module: batch=2, recurrent_hid_dim=32.
    batch, hid = 2, 32
    weight = jax.random.normal(k_w, (1, hid), jnp.float32) * 0.1
    bias = jax.random.normal(k_b, (1,), jnp.float32) * 0.1
    x = jax.random.normal(k_x, (batch, hid), jnp.float32)

    out = jax.block_until_ready(baseline_network(x, weight, bias))
    ref = jnp.maximum(x @ weight.T + bias, 0.0)
    assert out.shape == (batch, 1)
    assert jnp.allclose(out, ref, atol=1e-5, rtol=1e-5)

    # Ragged batch tiles with NO host-side padding copy (B=300 not tile-divisible).
    xb = jax.random.normal(k_x, (300, 256), jnp.float32)
    wb = jax.random.normal(k_w, (1, 256), jnp.float32) * 0.05
    out_b = jax.block_until_ready(baseline_network(xb, wb, bias))
    ref_b = jnp.maximum(xb @ wb.T + bias, 0.0)
    assert out_b.shape == (300, 1)
    assert jnp.allclose(out_b, ref_b, atol=1e-4, rtol=1e-4)

    # Force the H (reduction) grid axis + accumulator scratch path.
    out_h = jax.block_until_ready(baseline_network(xb, wb, bias, max_h_tile=128))
    assert jnp.allclose(out_h, ref_b, atol=1e-4, rtol=1e-4)

    # bf16 inputs: products and accumulation stay in f32 inside the kernel.
    xh = xb.astype(jnp.bfloat16)
    wh = wb.astype(jnp.bfloat16)
    out_bf = jax.block_until_ready(baseline_network(xh, wh, bias))
    ref_bf = jnp.maximum(xh.astype(jnp.float32) @ wh.astype(jnp.float32).T + bias, 0.0)
    assert out_bf.shape == (300, 1)
    assert jnp.allclose(out_bf.astype(jnp.float32), ref_bf, atol=2e-2, rtol=2e-2)

    print("KERNEL_OK")
</pallas_src>

<mosaic_0001>
module attributes {stable_mosaic.version = 11 : i64} {
  func.func @baseline_kernel(%arg0: i32, %arg1: i32, %arg2: memref<2x32xf32, #tpu.memory_space<vmem>>, %arg3: memref<1x32xf32, #tpu.memory_space<vmem>>, %arg4: memref<1x1xf32, #tpu.memory_space<smem>>, %arg5: memref<1x2xf32, #tpu.memory_space<vmem>>, %arg6: memref<2x32xf32, #tpu.memory_space<vmem>>) attributes {dimension_semantics = [#tpu.dimension_semantics<parallel>, #tpu.dimension_semantics<arbitrary>], iteration_bounds = array<i64: 1, 1>, scalar_prefetch = 0 : i64, scratch_operands = 1 : i64, tpu.core_type = #tpu.core_type<tc>, window_params = [{transform_indices = @transform_0, window_bounds = array<i64: 2, 32>}, {transform_indices = @transform_1, window_bounds = array<i64: 1, 32>}, {transform_indices = @transform_2, window_bounds = array<i64: 1, 1>}, {transform_indices = @transform_3, window_bounds = array<i64: 1, 2>}]} {
    %c0_i32 = arith.constant 0 : i32
    %0 = arith.cmpi eq, %arg1, %c0_i32 : i32
    %1 = arith.extui %0 : i1 to i32
    %c0_i32_0 = arith.constant 0 : i32
    %2 = arith.cmpi ne, %1, %c0_i32_0 : i32
    scf.if %2 {
      %cst = arith.constant 0.000000e+00 : f32
      %13 = vector.broadcast %cst : f32 to vector<2x32xf32>
      %c0_10 = arith.constant 0 : index
      %c0_11 = arith.constant 0 : index
      %14 = vector.load %arg6[%c0_10, %c0_11] : memref<2x32xf32, #tpu.memory_space<vmem>>, vector<2x32xf32>
      tpu.vector_store %arg6[%c0_10, %c0_11], %13 {strides = array<i32>} : memref<2x32xf32, #tpu.memory_space<vmem>>, vector<2x32xf32>,
    } else {
    }
    %c0 = arith.constant 0 : index
    %c0_1 = arith.constant 0 : index
    %3 = vector.load %arg2[%c0, %c0_1] : memref<2x32xf32, #tpu.memory_space<vmem>>, vector<2x32xf32>
    %c0_2 = arith.constant 0 : index
    %c0_3 = arith.constant 0 : index
    %4 = vector.load %arg3[%c0_2, %c0_3] : memref<1x32xf32, #tpu.memory_space<vmem>>, vector<1x32xf32>
    %5 = vector.broadcast %4 : vector<1x32xf32> to vector<2x32xf32>
    %6 = arith.mulf %3, %5 : vector<2x32xf32>
    %c0_4 = arith.constant 0 : index
    %c0_5 = arith.constant 0 : index
    %7 = vector.load %arg6[%c0_4, %c0_5] : memref<2x32xf32, #tpu.memory_space<vmem>>, vector<2x32xf32>
    %8 = arith.addf %7, %6 : vector<2x32xf32>
    %c0_6 = arith.constant 0 : index
    %c0_7 = arith.constant 0 : index
    %9 = vector.load %arg6[%c0_6, %c0_7] : memref<2x32xf32, #tpu.memory_space<vmem>>, vector<2x32xf32>
    tpu.vector_store %arg6[%c0_6, %c0_7], %8 {strides = array<i32>} : memref<2x32xf32, #tpu.memory_space<vmem>>, vector<2x32xf32>,
    %c0_i32_8 = arith.constant 0 : i32
    %10 = arith.cmpi eq, %arg1, %c0_i32_8 : i32
    %11 = arith.extui %10 : i1 to i32
    %c0_i32_9 = arith.constant 0 : i32
    %12 = arith.cmpi ne, %11, %c0_i32_9 : i32
    scf.if %12 {
      %c0_10 = arith.constant 0 : index
      %c0_11 = arith.constant 0 : index
      %13 = vector.load %arg6[%c0_10, %c0_11] : memref<2x32xf32, #tpu.memory_space<vmem>>, vector<2x32xf32>
      %cst = arith.constant dense<0.000000e+00> : vector<2xf32>
      %14 = vector.multi_reduction <add>, %13, %cst [1] : vector<2x32xf32> to vector<2xf32>
      %c0_12 = arith.constant 0 : index
      %c0_13 = arith.constant 0 : index
      %15 = memref.load %arg4[%c0_12, %c0_13] : memref<1x1xf32, #tpu.memory_space<smem>>
      %16 = vector.broadcast %15 : f32 to vector<2xf32>
      %17 = arith.addf %14, %16 : vector<2xf32>
      %cst_14 = arith.constant 0.000000e+00 : f32
      %18 = vector.broadcast %cst_14 : f32 to vector<2xf32>
      %19 = arith.maximumf %17, %18 : vector<2xf32>
      %20 = vector.shape_cast %19 : vector<2xf32> to vector<1x2xf32>
      %c0_15 = arith.constant 0 : index
      %c0_16 = arith.constant 0 : index
      %21 = vector.load %arg5[%c0_15, %c0_16] : memref<1x2xf32, #tpu.memory_space<vmem>>, vector<1x2xf32>
      tpu.vector_store %arg5[%c0_15, %c0_16], %20 {strides = array<i32>} : memref<1x2xf32, #tpu.memory_space<vmem>>, vector<1x2xf32>,
    } else {
    }
    return
  }
  func.func @transform_0(%arg0: i32, %arg1: i32) -> (i32, i32) {
    %c0_i32 = arith.constant 0 : i32
    return %arg0, %arg1 : i32, i32
  }
  func.func @transform_1(%arg0: i32, %arg1: i32) -> (i32, i32) {
    %c0_i32 = arith.constant 0 : i32
    %c0_i32_0 = arith.constant 0 : i32
    return %c0_i32, %arg1 : i32, i32
  }
  func.func @transform_2(%arg0: i32, %arg1: i32) -> (i32, i32) {
    %c0_i32 = arith.constant 0 : i32
    %c0_i32_0 = arith.constant 0 : i32
    %c0_i32_1 = arith.constant 0 : i32
    return %c0_i32, %c0_i32_0 : i32, i32
  }
  func.func @transform_3(%arg0: i32, %arg1: i32) -> (i32, i32) {
    %c0_i32 = arith.constant 0 : i32
    %c0_i32_0 = arith.constant 0 : i32
    return %c0_i32, %arg0 : i32, i32
  }
}

</mosaic_0001>

<bundles_post_ra>
// kernel: baseline_network.1
= control target key start
LH: loop header
LB: loop body
LE: loop exit
PB: predicated region body
PF: predicated region fallthrough
CT: control target
= control target key end

     0   :  { %vm20_vm0 = vcmask 254976   ;;  %v97_v0 = vmov 0.0   ;;  %s140_s0 = inlined_call_operand.vmem [shape: f32[2,32], index: 0, kind: input, shape index: {}]   ;;  %s141_s1 = inlined_call_operand.vmem [shape: f32[1,32], index: 1, kind: input, shape index: {}]   ;;  %s142_s2 = inlined_call_operand.<no memory space> [shape: f32[1,1], index: 2, kind: input, shape index: {}]   ;;  %s143_s3 = inlined_call_operand.hbm [shape: f32[1,2], index: 3, kind: output, shape index: {}]  }
   0x1   :  { %21 = vst.msk [vmem:[#allocation2] sm:$0x3] %vm20_vm0, %v97_v0 }
   0x2   :  { %9 = vsyncpa [#allocation5], 0  ;;  %v22_v1 = vld [vmem:[%s140_s0] sm:$0x3]  ;;  %v47_v8 = vlaneseq  ;;  %v43_v11 = vstv %s142_s2  ;;  %s98_s0 = smov [#allocation4]   ;;  %vm54_vm1 = vcmask 8192  }
   0x3   :  { %v70_v2 = vld [vmem:[%s141_s1] ss:$0 sm:$0xff]  ;;  %s62_s18 = sshll.u32 %s98_s0, 4  ;;  %s63_s18 = int_to_ptr.vmem [resolvable:$true] %s62_s18 }
   0x4   :  { %v30_v3 = vmul.f32 %v70_v2, %v22_v1  ;;  %v48_v9 = vand.u32 127, %v47_v8  ;;  %v50_v10 = vshrl.u32 %v47_v8, 7  ;;  %s73_s1 = scalar_lea.vmem %s63_s18, 16  ;;  %s77_s19 = scalar_lea.vmem %s63_s18, 32 }
   0x5   :  { %p74_p0 = scmp.ne.s32.totalorder %s63_s18, %s73_s1  ;;  %p78_p1 = scmp.lt.s32.totalorder %s63_s18, %s63_s18 }
   0x6   :  { %v51_v14 = vsub.s32 %v48_v9, %v50_v10  ;;  %p79_p2 = scmp.lt.s32.totalorder %s77_s19, %s73_s1 }
   0x8   :  { %v31_v4 = vld [vmem:[#allocation2] sm:$0x3]  ;;  %p80_p3 = por %p79_p2, %p78_p1 }
   0x9   :  { %v32_v5 = vadd.f32 %v31_v4, %v30_v3 }
   0xa   :  { %p81_p4 = pnand %p80_p3, %p74_p0 }
   0xb   :  { %34 = vst.msk [vmem:[#allocation2] sm:$0x3] %vm20_vm0, %v32_v5 }
  0x12   :  { %v38_v6 = vld [vmem:[#allocation2] sm:$0x3] }
  0x13   :  { %v39_v7 = vsel %vm20_vm0, %v38_v6, 0.0 }
  0x14   :  { %40 = vadd.xlane.f32.xlu0 %v39_v7 }
  0xa1   :  { %v41_v12 = vpop.xlane.xlu0 %40 }
  0xa2   :  { %v44_v13 = vadd.f32 %v43_v11, %v41_v12 }
  0xa4   :  { %v45_v15 = vmax.f32 %v44_v13, 0.0 }
  0xa6   :  { %v52_v16 = vrot.slane %v45_v15, %v51_v14 }
  0xa8   :  { %55 = vst.msk [vmem:[#allocation4] sm:$0x1] %vm54_vm1, %v52_v16 }
  0xa9   :  { %84 = shalt.err (!%p81_p4)
}
  0xaa   :  { %s85_s21 = scalar_lea.hbm %s143_s3, 16 }
  0xab   :  { %p86_p5 = scmp.ne.s32.totalorder %s143_s3, %s85_s21  ;;  %p89_p6 = scmp.lt.u32.totalorder %s85_s21, %s143_s3 }
  0xad   :  { %p91_p7 = pnand %p89_p6, %p86_p5 }
  0xaf   :  { %94 = shalt.err (!%p91_p7)
}
  0xb0   :  { %65 = dma.vmem_to_hbm [thread:$0]  %s63_s18, 16, %s143_s3, [#allocation5]  }
  0xb1   :  { %95 = dma.done.wait [#allocation5], 16  }
  0xb2   :  { %96 = vsyncadd [#allocation5], 4294967280 }
  0xb3   :  { %69 = vsyncpa [#allocation5], 1 }

</bundles_post_ra>
